<compile_context>
chip_gen: v7x
topology: tpu7x:2x2x1
jax: 0.10.0
libtpu: 0.0.40
codegen_flags: <defaults>
</compile_context>

<pallas_src>
import functools
import math

import jax
import jax.numpy as jnp
from jax.experimental import pallas as pl
from jax.experimental.pallas import tpu as pltpu


def _lcm(a, b):
    return a * b // math.gcd(a, b)


def _pick_tile(n, mult, target):
    """Largest multiple of `mult` that divides n and is <= min(n, target); None if none."""
    best = None
    t = mult
    cap = min(n, target)
    while t <= cap:
        if n % t == 0:
            best = t
        t += mult
    return best


def _pair_emb_kernel(reps, lp_ref, rp_ref, idxr_ref, idxc_ref, wst_ref, e_ref, o_ref):
    # lp_ref:   (1, tL, GW)     left projection, replicated to one 128-lane group only
    # rp_ref:   (1, 1,  FC)     right projection (+bias), flattened lane-dense column tile
    # idxr_ref: (1, tL, 1)      residue indices, row tile (f32)
    # idxc_ref: (1, 1, 1, tC)   residue indices, column tile (f32)
    # wst_ref:  (1, FC)         w_sep tiled to the block lane width
    # e_ref:    (tC, FC)        0/1 block-diagonal selector (bf16), E[j, j*dm + c] = 1
    # o_ref:    (1, tL, FC)     flattened output block (lane-dense, FC = tC*d_model)
    lpg = lp_ref[0]                                     # (tL, GW)
    rpf = rp_ref[0]                                     # (1,  FC)
    wst = wst_ref[...]                                  # (1,  FC)
    idx_i = idxr_ref[0]                                 # (tL, 1)
    idx_j = idxc_ref[0, 0]                              # (1,  tC)

    # One log per (i, j) pair -- EUP work / d_model vs. per-element evaluation.
    s = jnp.log(jnp.abs(idx_i - idx_j) + 1.0)           # (tL, tC) f32

    # Expand s across the d_model channels on the MXU.  3-way bf16 split keeps the
    # replication exact to f32: every product is (bf16 value) * 1.0 and every output
    # column accumulates exactly one non-zero term per pass.
    s_hi = s.astype(jnp.bfloat16)
    r1 = s - s_hi.astype(jnp.float32)
    s_mid = r1.astype(jnp.bfloat16)
    s_lo = (r1 - s_mid.astype(jnp.float32)).astype(jnp.bfloat16)
    e = e_ref[...]                                      # (tC, FC) bf16
    sep = (jnp.dot(s_hi, e, preferred_element_type=jnp.float32)
           + jnp.dot(s_mid, e, preferred_element_type=jnp.float32)
           + jnp.dot(s_lo, e, preferred_element_type=jnp.float32))   # (tL, FC)

    # Broadcast the left projection across the column tile by stacking whole
    # 128-lane groups (cheap vreg placement, no cross-lane movement).
    if reps > 1:
        lp_full = jnp.concatenate([lpg] * reps, axis=-1)   # (tL, FC)
    else:
        lp_full = lpg

    o_ref[0] = (lp_full + rpf + sep * wst).astype(o_ref.dtype)


@functools.partial(jax.jit, static_argnames=("tile_l", "tile_c", "out_dtype"))
def pair_emb_wo_templ(seq, idx, emb_table, proj_w, proj_b, *,
                      tile_l=None, tile_c=None, out_dtype=jnp.float32):
    """Forward pass of Pair_emb_wo_templ.

    seq: (B, L) int32 token ids in [0, d_seq)
    idx: (B, L) int32 residue indices
    emb_table: (d_seq, d_emb) float32            (nn.Embedding weight)
    proj_w: (d_model, d_model + 1) float32       (PyTorch Linear weight layout)
    proj_b: (d_model,) float32
    returns: (B, L, L, d_model) in out_dtype (float32 by default)
    """
    B, L = seq.shape
    d_emb = emb_table.shape[1]
    d_model = proj_w.shape[0]
    assert proj_w.shape[1] == 2 * d_emb + 1, "weight layout mismatch"

    # ---- Static tile / padding selection ----------------------------------------
    g = _lcm(d_model, 128) // d_model        # column copies per 128-lane group
    gw = g * d_model                         # group lane width (multiple of 128)
    base = _lcm(8, g)
    target_c = max(g, 4096 // d_model)       # aim for ~4096-lane output blocks

    def _target_l(lp_):
        t = min(256, lp_)
        if B == 1 and lp_ >= 16:             # keep a >=2 parallel axis for v7x's 2 TCs
            t = min(t, lp_ // 2)
        return max(8, t)

    if tile_l is not None or tile_c is not None:
        tl = tile_l if tile_l is not None else _pick_tile(L, 8, _target_l(L))
        tc = tile_c if tile_c is not None else _pick_tile(L, g, target_c)
        if tl is None or tc is None or L % tl or L % tc:
            raise ValueError("explicit tiles must divide L")
        if (tl % 8 and tl != L) or tc % g:
            raise ValueError(f"tile_l must be a multiple of 8 (or == L); "
                             f"tile_c must be a multiple of {g}")
        l_pad = L
    else:
        tl = _pick_tile(L, 8, _target_l(L))
        tc = _pick_tile(L, g, target_c)
        if tl is None or tc is None:         # pad L instead of exploding the tile
            l_pad = -(-L // base) * base
            tl = _pick_tile(l_pad, 8, _target_l(l_pad))
            tc = _pick_tile(l_pad, g, target_c)
        else:
            l_pad = L

    flat_c = tc * d_model                    # lane width of a block, multiple of 128
    reps = tc // g

    if l_pad != L:
        pad = l_pad - L
        seq = jnp.pad(seq, ((0, 0), (0, pad)))       # pad with token 0 (valid id)
        idx = jnp.pad(idx, ((0, 0), (0, pad)))

    # ---- Glue hoisted to XLA (fuses with the embedding gather) -------------------
    seq_emb = emb_table[seq]                                  # (B, Lp, d_emb)
    w_t = proj_w.T                                            # (2*d_emb+1, d_model)
    w_left = w_t[:d_emb, :]
    w_right = w_t[d_emb:2 * d_emb, :]
    w_sep = w_t[2 * d_emb, :]                                 # (d_model,)

    hi = jax.lax.Precision.HIGHEST
    lp = jnp.einsum("ble,em->blm", seq_emb, w_left, precision=hi)            # (B,Lp,dm)
    rp = jnp.einsum("ble,em->blm", seq_emb, w_right, precision=hi) + proj_b  # bias folded

    # Kernel operands (all small relative to the output):
    lp_group = jnp.tile(lp, (1, 1, g)) if g > 1 else lp       # (B, Lp, gw)
    rp_flat = rp.reshape(B, 1, l_pad * d_model)               # (B, 1, Lp*dm)
    wst = jnp.tile(w_sep.reshape(1, d_model), (1, tc))        # (1, flat_c)
    e_sel = jnp.repeat(jnp.eye(tc, dtype=jnp.float32), d_model, axis=1
                       ).astype(jnp.bfloat16)                 # (tc, flat_c), 0/1
    idx_f = idx.astype(jnp.float32)
    idx_row = idx_f.reshape(B, l_pad, 1)                      # (B, Lp, 1)
    idx_col = idx_f.reshape(B, l_pad // tc, 1, tc)            # (B, nC, 1, tc)

    # ---- Pallas call --------------------------------------------------------------
    grid = (B, l_pad // tl, l_pad // tc)
    n_pairs = B * l_pad * l_pad
    out_bytes = n_pairs * d_model * jnp.dtype(out_dtype).itemsize
    cost = pl.CostEstimate(
        flops=n_pairs * d_model * (3 + 6 * tc),               # VPU adds/mul + MXU expansion
        transcendentals=n_pairs,                              # one log per (i, j) pair
        bytes_accessed=out_bytes + 4 * B * l_pad * (gw + d_model + 2)
        + 2 * tc * flat_c + 4 * flat_c,
    )

    kernel = functools.partial(_pair_emb_kernel, reps)
    out_flat = pl.pallas_call(
        kernel,
        out_shape=jax.ShapeDtypeStruct((B, l_pad, l_pad * d_model), out_dtype),
        grid_spec=pltpu.PrefetchScalarGridSpec(
            num_scalar_prefetch=0,
            grid=grid,
            in_specs=[
                # left projection, one 128-lane group, constant across j
                pl.BlockSpec((1, tl, gw), lambda b, i, j: (b, i, 0)),
                # right projection + bias, flattened lane-dense column tile
                pl.BlockSpec((1, 1, flat_c), lambda b, i, j: (b, 0, j)),
                # residue indices, row tile
                pl.BlockSpec((1, tl, 1), lambda b, i, j: (b, i, 0)),
                # residue indices, column tile (one value per column, NOT per channel)
                pl.BlockSpec((1, 1, 1, tc), lambda b, i, j: (b, j, 0, 0)),
                # seqsep weight row, tiled to the block lane width (constant block)
                pl.BlockSpec((1, flat_c), lambda b, i, j: (0, 0)),
                # block-diagonal 0/1 selector for the MXU expansion (constant block)
                pl.BlockSpec((tc, flat_c), lambda b, i, j: (0, 0)),
            ],
            out_specs=pl.BlockSpec((1, tl, flat_c), lambda b, i, j: (b, i, j)),
        ),
        compiler_params=pltpu.CompilerParams(
            dimension_semantics=("parallel", "parallel", "parallel"),
            vmem_limit_bytes=48 * 1024 * 1024,   # safe on v7x (64 MiB), ample on v5e/v6e
        ),
        cost_estimate=cost,
    )(lp_group, rp_flat, idx_row, idx_col, wst, e_sel)

    out = out_flat.reshape(B, l_pad, l_pad, d_model)
    if l_pad != L:
        out = out[:, :L, :L, :]
    return out


def _reference(seq, idx, emb_table, proj_w, proj_b):
    """Plain-JAX reference mirroring the PyTorch forward exactly."""
    B, L = seq.shape
    s = emb_table[seq]                                          # (B, L, d_emb)
    left = jnp.repeat(s[:, :, None, :], L, axis=2)              # (B, L, L, d_emb)
    right = jnp.repeat(s[:, None, :, :], L, axis=1)             # (B, L, L, d_emb)
    seqsep = jnp.abs(idx[:, :, None] - idx[:, None, :]) + 1
    seqsep = jnp.log(seqsep.astype(jnp.float32)).reshape(B, L, L, 1)
    pair = jnp.concatenate((left, right, seqsep), axis=-1)
    return jnp.einsum("blme,oe->blmo", pair, proj_w,
                      precision=jax.lax.Precision.HIGHEST) + proj_b


if __name__ == "__main__":
    key = jax.random.PRNGKey(0)

    def make_case(k, B, L, d_model, d_seq=21):
        d_emb = d_model // 2
        k_emb, k_w, k_b, k_seq, k_idx = jax.random.split(k, 5)
        emb_table = jax.random.normal(k_emb, (d_seq, d_emb), dtype=jnp.float32)
        proj_w = jax.random.normal(k_w, (d_model, d_model + 1), dtype=jnp.float32) * 0.1
        proj_b = jax.random.normal(k_b, (d_model,), dtype=jnp.float32) * 0.1
        seq = jax.random.randint(k_seq, (B, L), 0, d_seq, dtype=jnp.int32)
        idx = jnp.broadcast_to(jnp.arange(L, dtype=jnp.int32), (B, L)) \
            + jax.random.randint(k_idx, (B, 1), 0, 5, dtype=jnp.int32)
        return seq, idx, emb_table, proj_w, proj_b

    k1, k2 = jax.random.split(key)

    # Case 1: explicit 2-D tiling -> grid (2, 1, 2), flat lane width 128.
    args1 = make_case(k1, B=2, L=8, d_model=32)
    out1 = jax.block_until_ready(pair_emb_wo_templ(*args1, tile_l=8, tile_c=4))
    ref1 = _reference(*args1)
    assert out1.shape == ref1.shape
    assert jnp.allclose(out1, ref1, atol=1e-4, rtol=1e-4), "case 1 mismatch vs reference"

    # Case 2: auto tiles with L padding (L=12 -> 16), in-kernel group broadcast (reps=4),
    # and a split row axis so B=1 still exposes a parallel dimension.
    args2 = make_case(k2, B=1, L=12, d_model=32)
    out2 = jax.block_until_ready(pair_emb_wo_templ(*args2))
    ref2 = _reference(*args2)
    assert out2.shape == ref2.shape
    assert jnp.allclose(out2, ref2, atol=1e-4, rtol=1e-4), "case 2 mismatch vs reference"

    print("KERNEL_OK")
</pallas_src>

<mosaic_0001>
module attributes {stable_mosaic.version = 11 : i64} {
  func.func @_pair_emb_kernel(%arg0: i32, %arg1: i32, %arg2: i32, %arg3: memref<1x8x128xf32, #tpu.memory_space<vmem>>, %arg4: memref<1x1x128xf32, #tpu.memory_space<vmem>>, %arg5: memref<1x8x1xf32, #tpu.memory_space<vmem>>, %arg6: memref<1x1x1x4xf32, #tpu.memory_space<vmem>>, %arg7: memref<1x128xf32, #tpu.memory_space<vmem>>, %arg8: memref<4x128xbf16, #tpu.memory_space<vmem>>, %arg9: memref<1x8x128xf32, #tpu.memory_space<vmem>>) attributes {dimension_semantics = [#tpu.dimension_semantics<parallel>, #tpu.dimension_semantics<parallel>, #tpu.dimension_semantics<parallel>], iteration_bounds = array<i64: 2, 1, 2>, scalar_prefetch = 0 : i64, scratch_operands = 0 : i64, tpu.core_type = #tpu.core_type<tc>, window_params = [{transform_indices = @transform_0, window_bounds = array<i64: 1, 8, 128>}, {transform_indices = @transform_1, window_bounds = array<i64: 1, 1, 128>}, {transform_indices = @transform_2, window_bounds = array<i64: 1, 8, 1>}, {transform_indices = @transform_3, window_bounds = array<i64: 1, 1, 1, 4>}, {pipeline_mode = #tpu.pipeline_mode<synchronous>, transform_indices = @transform_4, window_bounds = array<i64: 1, 128>}, {pipeline_mode = #tpu.pipeline_mode<synchronous>, transform_indices = @transform_5, window_bounds = array<i64: 4, 128>}, {transform_indices = @transform_6, window_bounds = array<i64: 1, 8, 128>}]} {
    %c0 = arith.constant 0 : index
    %c0_0 = arith.constant 0 : index
    %c0_1 = arith.constant 0 : index
    %0 = vector.load %arg3[%c0, %c0_0, %c0_1] : memref<1x8x128xf32, #tpu.memory_space<vmem>>, vector<1x8x128xf32>
    %1 = vector.shape_cast %0 : vector<1x8x128xf32> to vector<8x128xf32>
    %c0_2 = arith.constant 0 : index
    %c0_3 = arith.constant 0 : index
    %c0_4 = arith.constant 0 : index
    %2 = vector.load %arg4[%c0_2, %c0_3, %c0_4] : memref<1x1x128xf32, #tpu.memory_space<vmem>>, vector<1x1x128xf32>
    %3 = vector.shape_cast %2 : vector<1x1x128xf32> to vector<1x128xf32>
    %c0_5 = arith.constant 0 : index
    %c0_6 = arith.constant 0 : index
    %4 = vector.load %arg7[%c0_5, %c0_6] : memref<1x128xf32, #tpu.memory_space<vmem>>, vector<1x128xf32>
    %c0_7 = arith.constant 0 : index
    %c0_8 = arith.constant 0 : index
    %c0_9 = arith.constant 0 : index
    %5 = vector.load %arg5[%c0_7, %c0_8, %c0_9] : memref<1x8x1xf32, #tpu.memory_space<vmem>>, vector<1x8x1xf32>
    %6 = vector.shape_cast %5 : vector<1x8x1xf32> to vector<8x1xf32>
    %c0_10 = arith.constant 0 : index
    %c0_11 = arith.constant 0 : index
    %c0_12 = arith.constant 0 : index
    %c0_13 = arith.constant 0 : index
    %7 = vector.load %arg6[%c0_10, %c0_11, %c0_12, %c0_13] : memref<1x1x1x4xf32, #tpu.memory_space<vmem>>, vector<1x1x1x4xf32>
    %8 = vector.shape_cast %7 : vector<1x1x1x4xf32> to vector<1x4xf32>
    %9 = vector.broadcast %6 : vector<8x1xf32> to vector<8x4xf32>
    %10 = vector.broadcast %8 : vector<1x4xf32> to vector<8x4xf32>
    %11 = arith.subf %9, %10 : vector<8x4xf32>
    %12 = math.absf %11 : vector<8x4xf32>
    %cst = arith.constant 1.000000e+00 : f32
    %13 = vector.broadcast %cst : f32 to vector<8x4xf32>
    %14 = arith.addf %12, %13 : vector<8x4xf32>
    %15 = math.log %14 : vector<8x4xf32>
    %16 = arith.truncf %15 : vector<8x4xf32> to vector<8x4xbf16>
    %17 = arith.extf %16 : vector<8x4xbf16> to vector<8x4xf32>
    %18 = arith.subf %15, %17 : vector<8x4xf32>
    %19 = arith.truncf %18 : vector<8x4xf32> to vector<8x4xbf16>
    %20 = arith.extf %19 : vector<8x4xbf16> to vector<8x4xf32>
    %21 = arith.subf %18, %20 : vector<8x4xf32>
    %22 = arith.truncf %21 : vector<8x4xf32> to vector<8x4xbf16>
    %c0_14 = arith.constant 0 : index
    %c0_15 = arith.constant 0 : index
    %23 = vector.load %arg8[%c0_14, %c0_15] : memref<4x128xbf16, #tpu.memory_space<vmem>>, vector<4x128xbf16>
    %cst_16 = arith.constant dense<0.000000e+00> : vector<8x128xf32>
    %24 = tpu.matmul %16, %23, %cst_16 {dimension_numbers = #tpu.dot_dimension_numbers<[1], [0], [0], [1], [0, 0, 1, 1], [], []>} : vector<8x4xbf16>, vector<4x128xbf16>, vector<8x128xf32> -> vector<8x128xf32>
    %cst_17 = arith.constant dense<0.000000e+00> : vector<8x128xf32>
    %25 = tpu.matmul %19, %23, %cst_17 {dimension_numbers = #tpu.dot_dimension_numbers<[1], [0], [0], [1], [0, 0, 1, 1], [], []>} : vector<8x4xbf16>, vector<4x128xbf16>, vector<8x128xf32> -> vector<8x128xf32>
    %26 = arith.addf %24, %25 : vector<8x128xf32>
    %cst_18 = arith.constant dense<0.000000e+00> : vector<8x128xf32>
    %27 = tpu.matmul %22, %23, %cst_18 {dimension_numbers = #tpu.dot_dimension_numbers<[1], [0], [0], [1], [0, 0, 1, 1], [], []>} : vector<8x4xbf16>, vector<4x128xbf16>, vector<8x128xf32> -> vector<8x128xf32>
    %28 = arith.addf %26, %27 : vector<8x128xf32>
    %29 = vector.broadcast %3 : vector<1x128xf32> to vector<8x128xf32>
    %30 = arith.addf %1, %29 : vector<8x128xf32>
    %31 = vector.broadcast %4 : vector<1x128xf32> to vector<8x128xf32>
    %32 = arith.mulf %28, %31 : vector<8x128xf32>
    %33 = arith.addf %30, %32 : vector<8x128xf32>
    %c0_19 = arith.constant 0 : index
    %c0_20 = arith.constant 0 : index
    %c0_21 = arith.constant 0 : index
    %34 = vector.load %arg9[%c0_19, %c0_20, %c0_21] : memref<1x8x128xf32, #tpu.memory_space<vmem>>, vector<1x8x128xf32>
    %35 = vector.shape_cast %34 : vector<1x8x128xf32> to vector<8x128xf32>
    %36 = vector.shape_cast %33 : vector<8x128xf32> to vector<1x8x128xf32>
    tpu.vector_store %arg9[%c0_19, %c0_20, %c0_21], %36 {strides = array<i32>} : memref<1x8x128xf32, #tpu.memory_space<vmem>>, vector<1x8x128xf32>,
    return
  }
  func.func @transform_0(%arg0: i32, %arg1: i32, %arg2: i32) -> (i32, i32, i32) {
    %c0_i32 = arith.constant 0 : i32
    %c0_i32_0 = arith.constant 0 : i32
    return %arg0, %arg1, %c0_i32 : i32, i32, i32
  }
  func.func @transform_1(%arg0: i32, %arg1: i32, %arg2: i32) -> (i32, i32, i32) {
    %c0_i32 = arith.constant 0 : i32
    %c0_i32_0 = arith.constant 0 : i32
    return %arg0, %c0_i32, %arg2 : i32, i32, i32
  }
  func.func @transform_2(%arg0: i32, %arg1: i32, %arg2: i32) -> (i32, i32, i32) {
    %c0_i32 = arith.constant 0 : i32
    %c0_i32_0 = arith.constant 0 : i32
    return %arg0, %arg1, %c0_i32 : i32, i32, i32
  }
  func.func @transform_3(%arg0: i32, %arg1: i32, %arg2: i32) -> (i32, i32, i32, i32) {
    %c0_i32 = arith.constant 0 : i32
    %c0_i32_0 = arith.constant 0 : i32
    %c0_i32_1 = arith.constant 0 : i32
    return %arg0, %arg2, %c0_i32, %c0_i32_0 : i32, i32, i32, i32
  }
  func.func @transform_4(%arg0: i32, %arg1: i32, %arg2: i32) -> (i32, i32) {
    %c0_i32 = arith.constant 0 : i32
    %c0_i32_0 = arith.constant 0 : i32
    %c0_i32_1 = arith.constant 0 : i32
    return %c0_i32, %c0_i32_0 : i32, i32
  }
  func.func @transform_5(%arg0: i32, %arg1: i32, %arg2: i32) -> (i32, i32) {
    %c0_i32 = arith.constant 0 : i32
    %c0_i32_0 = arith.constant 0 : i32
    %c0_i32_1 = arith.constant 0 : i32
    return %c0_i32, %c0_i32_0 : i32, i32
  }
  func.func @transform_6(%arg0: i32, %arg1: i32, %arg2: i32) -> (i32, i32, i32) {
    %c0_i32 = arith.constant 0 : i32
    return %arg0, %arg1, %arg2 : i32, i32, i32
  }
}

</mosaic_0001>

<bundles_post_ra>
// kernel: tile.13
= control target key start
LH: loop header
LB: loop body
LE: loop exit
PB: predicated region body
PF: predicated region fallthrough
CT: control target
= control target key end

     0   :  { %vm82_vm0 = vcmask 1047556   ;;  %vm84_vm1 = vcmask 261120   ;;  %s195_s9 = smov 96   ;;  %s196_s14 = smov 32   ;;  %vm103_vm2 = vcmask 1048320   ;;  %vm124_vm3 = vcmask 785920   ;;  %s289_s0 = inlined_call_operand.vmem [shape: f32[2,8,4,32], index: 0, kind: input, shape index: {}]   ;;  %s290_s1 = inlined_call_operand.vmem [shape: f32[2,8,128], index: 1, kind: output, shape index: {}]  }
   0x1   :  { %v180_v0 = vld [vmem:[%s289_s0 + $0x1c] sm:$0xf]  ;;  %v181_v1 = vld [vmem:[%s289_s0 + $0x18] sm:$0xf]  ;;  %v182_v2 = vld [vmem:[%s289_s0 + $0x14] sm:$0xf] }
   0x2   :  { %48 = vst [vmem:[#allocation0 + $0x38] sm:$0xf] %v180_v0  ;;  %53 = vst [vmem:[#allocation0 + $0x30] sm:$0xf] %v181_v1  ;;  %v183_v3 = vld [vmem:[%s289_s0 + $0x10] sm:$0xf] }
   0x3   :  { %58 = vst [vmem:[#allocation0 + $0x28] sm:$0xf] %v182_v2  ;;  %v184_v4 = vld [vmem:[%s289_s0 + $0xc] sm:$0xf]  ;;  %v185_v5 = vld [vmem:[%s289_s0 + $0x8] sm:$0xf] }
   0x4   :  { %63 = vst [vmem:[#allocation0 + $0x20] sm:$0xf] %v183_v3  ;;  %68 = vst [vmem:[#allocation0 + $0x18] sm:$0xf] %v184_v4  ;;  %v186_v6 = vld [vmem:[%s289_s0 + $0x4] sm:$0xf] }
   0x5   :  { %73 = vst [vmem:[#allocation0 + $0x10] sm:$0xf] %v185_v5  ;;  %v78_v7 = vld [vmem:[%s289_s0] sm:$0xf]  ;;  %77 = vst [vmem:[#allocation0 + $0x8] sm:$0xf] %v186_v6 }
   0x6   :  { %79 = vst [vmem:[#allocation0] sm:$0xf] %v78_v7  ;;  %v172_v8 = vld [vmem:[%s289_s0 + $0x3c] sm:$0xf]  ;;  %v173_v9 = vld [vmem:[%s289_s0 + $0x38] sm:$0xf] }
   0x7   :  { %8 = vst [vmem:[#allocation0 + $0x78] sm:$0xf] %v172_v8  ;;  %13 = vst [vmem:[#allocation0 + $0x70] sm:$0xf] %v173_v9  ;;  %v174_v10 = vld [vmem:[%s289_s0 + $0x34] sm:$0xf] }
   0x8   :  { %v175_v11 = vld [vmem:[%s289_s0 + $0x30] sm:$0xf]  ;;  %v176_v12 = vld [vmem:[%s289_s0 + $0x2c] sm:$0xf]  ;;  %18 = vst [vmem:[#allocation0 + $0x68] sm:$0xf] %v174_v10 }
   0x9   :  { %23 = vst [vmem:[#allocation0 + $0x60] sm:$0xf] %v175_v11  ;;  %28 = vst [vmem:[#allocation0 + $0x58] sm:$0xf] %v176_v12  ;;  %v177_v13 = vld [vmem:[%s289_s0 + $0x28] sm:$0xf] }
   0xa   :  { %v178_v14 = vld [vmem:[%s289_s0 + $0x24] sm:$0xf]  ;;  %v179_v15 = vld [vmem:[%s289_s0 + $0x20] sm:$0xf]  ;;  %33 = vst [vmem:[#allocation0 + $0x50] sm:$0xf] %v177_v13 }
   0xb   :  { %38 = vst [vmem:[#allocation0 + $0x48] sm:$0xf] %v178_v14  ;;  %43 = vst [vmem:[#allocation0 + $0x40] sm:$0xf] %v179_v15  ;;  %s194_s0 = smov 64   ;;  %vm145_vm4 = vcmask 523520  }
   0xc   :  { %v119_v16 = vld [vmem:[#allocation0 + $0x2] ss:$8 sm:$0xf0]   ;;  %v98_v17 = vld [vmem:[#allocation0 + $0x3] ss:$8 sm:$0xf0]  }
   0xd   :  { %v117_v18 = vld [vmem:[#allocation0 + $0x2] ss:$8 sm:$0xf]   ;;  %v96_v19 = vld [vmem:[#allocation0 + $0x3] ss:$8 sm:$0xf]  }
   0xe   :  { %v121_v20 = vsel %vm82_vm0, %v119_v16, %v117_v18  ;;  %v100_v21 = vsel %vm82_vm0, %v98_v17, %v96_v19  ;;  %v138_v24 = vld [vmem:[#allocation0 + $0x1] ss:$8 sm:$0xf]   ;;  %v80_v32 = vld [vmem:[#allocation0] ss:$8 sm:$0xf]  }
   0xf   :  { %122 = vrot.lane.b32.xlu1 %v121_v20, %s194_s0  ;;  %101 = vrot.lane.b32.xlu0 %v100_v21, %s195_s9  ;;  %v140_v25 = vld [vmem:[#allocation0 + $0x1] ss:$8 sm:$0xf0]   ;;  %v81_v33 = vld [vmem:[#allocation0] ss:$8 sm:$0xf0]  }
  0x10   :  { %v129_v22 = vld [vmem:[#allocation0 + $0x42] ss:$8 sm:$0xf0]   ;;  %v108_v23 = vld [vmem:[#allocation0 + $0x43] ss:$8 sm:$0xf0]   ;;  %v83_v34 = vsel %vm82_vm0, %v81_v33, %v80_v32  ;;  %v142_v38 = vsel %vm82_vm0, %v140_v25, %v138_v24 }
  0x11   :  { %v150_v31 = vld [vmem:[#allocation0 + $0x41] ss:$8 sm:$0xf0]   ;;  %v89_v36 = vld [vmem:[#allocation0 + $0x40] ss:$8 sm:$0xf0]  }
  0x12   :  { %v127_v26 = vld [vmem:[#allocation0 + $0x42] ss:$8 sm:$0xf]   ;;  %v106_v27 = vld [vmem:[#allocation0 + $0x43] ss:$8 sm:$0xf]  }
  0x13   :  { %v131_v28 = vsel %vm82_vm0, %v129_v22, %v127_v26  ;;  %v110_v29 = vsel %vm82_vm0, %v108_v23, %v106_v27  ;;  %v148_v30 = vld [vmem:[#allocation0 + $0x41] ss:$8 sm:$0xf]   ;;  %v87_v35 = vld [vmem:[#allocation0 + $0x40] ss:$8 sm:$0xf]  }
  0x14   :  { %132 = vrot.lane.b32.xlu1 %v131_v28, %s194_s0  ;;  %111 = vrot.lane.b32.xlu0 %v110_v29, %s195_s9  ;;  %v152_v37 = vsel %vm82_vm0, %v150_v31, %v148_v30  ;;  %85 = vst.msk [vmem:[%s290_s1] sm:$0xff] %vm84_vm1, %v83_v34   ;;  %v91_v39 = vsel %vm82_vm0, %v89_v36, %v87_v35 }
  0x15   :  { %187 = vst.msk [vmem:[%s290_s1 + $0x8] sm:$0xff] %vm84_vm1, %v91_v39  }
  0x18   :  { %153 = vrot.lane.b32.xlu1 %v152_v37, %s196_s14  ;;  %143 = vrot.lane.b32.xlu0 %v142_v38, %s196_s14 }
  0x81   :  { %v123_v40 = vpop.permute.xlu1 %122   ;;  %v102_v41 = vpop.permute.xlu0 %101  }
  0x82   :  { %104 = vst.msk [vmem:[%s290_s1] sm:$0xff] %vm103_vm2, %v102_v41  }
  0x83   :  { %125 = vst.msk [vmem:[%s290_s1] sm:$0xff] %vm124_vm3, %v123_v40  }
  0x86   :  { %v133_v42 = vpop.permute.xlu1 %132   ;;  %v112_v43 = vpop.permute.xlu0 %111  }
  0x87   :  { %188 = vst.msk [vmem:[%s290_s1 + $0x8] sm:$0xff] %vm103_vm2, %v112_v43  }
  0x88   :  { %189 = vst.msk [vmem:[%s290_s1 + $0x8] sm:$0xff] %vm124_vm3, %v133_v42  }
  0x8a   :  { %v154_v44 = vpop.permute.xlu1 %153   ;;  %v144_v45 = vpop.permute.xlu0 %143  }
  0x8b   :  { %190 = vst.msk [vmem:[%s290_s1 + $0x8] sm:$0xff] %vm145_vm4, %v154_v44   ;;  %146 = vst.msk [vmem:[%s290_s1] sm:$0xff] %vm145_vm4, %v144_v45  }

// kernel: pair_emb_wo_templ.1
= control target key start
LH: loop header
LB: loop body
LE: loop exit
PB: predicated region body
PF: predicated region fallthrough
CT: control target
= control target key end

     0   :  { %s881_s21 = smov 0   ;;  %s883_s22 = smov 0   ;;  %s967_s0 = inlined_call_operand.vmem [shape: f32[2,8,128], index: 0, kind: input, shape index: {}]   ;;  %s968_s1 = inlined_call_operand.vmem [shape: f32[2,1,256], index: 1, kind: input, shape index: {}]   ;;  %s969_s2 = inlined_call_operand.vmem [shape: f32[2,8,1], index: 2, kind: input, shape index: {}]   ;;  %s970_s3 = inlined_call_operand.vmem [shape: f32[2,2,1,4], index: 3, kind: input, shape index: {}]   ;;  %s971_s4 = inlined_call_operand.vmem [shape: f32[1,128], index: 4, kind: input, shape index: {}]   ;;  %s972_s5 = inlined_call_operand.vmem [shape: bf16[4,128], index: 5, kind: input, shape index: {}]   ;;  %s973_s6 = inlined_call_operand.vmem [shape: f32[2,8,256], index: 6, kind: output, shape index: {}]  }
   0x1   :  { %s885_s23 = smov 0   ;;  %s887_s24 = smov 0  }
   0x2   :  { %s889_s25 = smov 0  }
   0x3 LB: > { %s28_s26 = sadd.s32 1, %s833_s23  ;;  %s35_s27 = sadd.s32 1, %s837_s24  ;;  %s841_s25 = sphi %s889_s25, %s16_s25   ;;  %s837_s24 = sphi %s887_s24, %s977_s24   ;;  %s833_s23 = sphi %s885_s23, %s976_s23   ;;  %s829_s22 = sphi %s883_s22, %s975_s22   ;;  %s825_s21 = sphi %s881_s21, %s974_s21  }
   0x4   : > { %p29_p0 = scmp.ge.s32.totalorder %s28_s26, 2  ;;  %p713_p1 = scmp.ge.s32.totalorder %s841_s25, 1 }
   0x5   : > { %p281_p2 = scmp.lt.s32.totalorder %s841_s25, 5 }
   0x6   : > { %s979_s26 = smov (%p29_p0, %s28_s26), 0  ;;  %s981_s27 = smov (!%p29_p0, %s35_s27), %s837_s24 }
   0x7   : > { %p282_p3 = pnand %p713_p1, %p281_p2  ;;  %p37_p4 = scmp.ge.s32.totalorder %s981_s27, 2 }
   0x8   : > { %p341_p5 = scmp.lt.s32.totalorder (!%p282_p3), %s829_s22, 1  ;;  %v843_v0 = vmov (!%p282_p3), 0   ;;  %v410_v2 = vld [vmem:[%s972_s5] sm:$0x3] (!%p282_p3)  ;;  %vm415_vm0 = vcmask (!%p282_p3), 1041408   ;;  %v844_v3 = vmov (!%p282_p3), 0.0  }
   0x9   : > { %s983_s27 = smov (%p37_p4, %s981_s27), 0  ;;  %285 = sbr.rel (%p282_p3) target bundleno = 400 (0x190), region = 44 }
   0xa   : > { %800 = vset.pattern.permute.xlu0 (!%p282_p3), %v843_v0  ;;  %740 = vmatprep.subr.bf16.mxu0 (!%p282_p3), %v844_v3  ;;  %v417_v4 = vsel (!%p282_p3), %vm415_vm0, %v410_v2, 0  ;;  %vm845_vm1 = vmmov (!%p282_p3), 0   ;;  %p350_p6 = scmp.lt.s32.totalorder (!%p282_p3), %s825_s21, 1  ;;  %vm411_vm2 = vcmask (!%p282_p3), 31744   ;;  %v725_v25 = vld [vmem:[%s971_s4] ss:$0 sm:$0xff] (!%p282_p3) }
   0xb   : > { %734 = vmatprep.subr.bf16.mxu1 (!%p282_p3), %v844_v3  ;;  %741 = vmatpush3.bf16.msra.mxu0 (!%p282_p3), %v417_v4 }
   0xc   : > { %735 = vmatpush3.bf16.msra.mxu1 (!%p282_p3), %v417_v4  ;;  %746 = vmatprep.subr.bf16.mxu0 (!%p282_p3), %v844_v3 }
   0xd   : > { %742 = vmatprep.mubr.msk.bf16.mxu0 (!%p282_p3), %vm845_vm1, %v844_v3  ;;  %736 = vmatprep.mubr.msk.bf16.mxu1 (!%p282_p3), %vm845_vm1, %v844_v3 }
  0x10   : > { %s985_s22 = smov (!%p341_p5, %s829_s22), 1  ;;  %s987_s21 = smov (!%p350_p6, %s825_s21), 1 }
  0x11   : > { %s714_s28 = sshll.u32 %s985_s22, 3  ;;  %s715_s10 = sshll.u32 %s985_s22, 1 }
  0x12   : > { %s361_s7 = scalar_lea.vmem %s969_s2, %s714_s28  ;;  %s929_s11 = sadd.s32 %s715_s10, %s987_s21 }
  0x13   : > { %v385_v1 = vld [vmem:[%s361_s7] sm:$0xff]  ;;  %s368_s14 = scalar_lea.vmem %s970_s3, %s929_s11  ;;  %s354_s17 = scalar_lea.vmem %s968_s1, %s929_s11 }
  0x14   : > { %389 = vperm.xlu0 %800, %v385_v1   ;;  %v720_v5 = vld [vmem:[%s368_s14] ss:$0 sm:$0xff]  ;;  %s347_s20 = scalar_lea.vmem %s967_s0, %s714_s28  ;;  %s719_s30 = sshll.u32 %s929_s11, 3 }
  0x15   : > { %v724_v23 = vld [vmem:[%s354_s17] ss:$0 sm:$0xff]  ;;  %s380_s28 = scalar_lea.vmem %s973_s6, %s719_s30 }
  0x16   : > { %v382_v24 = vld [vmem:[%s347_s20] sm:$0xff] }
  0x17   : > { %v552_v27 = vadd.f32 %v724_v23, %v382_v24 }
  0x93   : > { %v390_v6 = vpop.permute.xlu0 %389 }
  0x94   : > { %v398_v7 = vsub.f32 %v390_v6, %v720_v5 }
  0x96   : > { %v399_v8 = vand.u32 2147483647, %v398_v7 }
  0x98   : > { %v400_v9 = vadd.f32 1.0, %v399_v8 }
  0x9a   : > { %801 = vlog2.f32 %v400_v9 }
  0xa4   : > { %v802_v10 = vpop.eup %801 }
  0xa5   : > { %v402_v11 = vmul.f32 0.6931472, %v802_v10 }
  0xa7   : > { %v403_v12 = vpack.c.bf16 %v402_v11, %v402_v11 }
  0xa9   : > { %v404_v13 = vunpack.c.l.bf16 %v403_v12  ;;  %743 = vmatmul.mubr.msk.bf16.vlgmr.msra.gmra.mrb[0].mxu0 %vm411_vm2, %v403_v12 }
  0xaa   : > { %747 = vmatpush3.bf16.msra.mxu0 %v417_v4  ;;  %748 = vmatprep.mubr.msk.bf16.mxu0 %vm845_vm1, %v844_v3 }
  0xab   : > { %v405_v14 = vsub.f32 %v402_v11, %v404_v13 }
  0xad   : > { %v406_v15 = vpack.c.bf16 %v405_v14, %v405_v14 }
  0xaf   : > { %v407_v16 = vunpack.c.l.bf16 %v406_v15  ;;  %737 = vmatmul.mubr.msk.bf16.vlgmr.msra.gmra.mrb[0].mxu1 %vm411_vm2, %v406_v15 }
  0xb1   : > { %v408_v17 = vsub.f32 %v405_v14, %v407_v16 }
  0xb3   : > { %v409_v18 = vpack.c.bf16 %v408_v17, %v408_v17 }
  0xb5   : > { %749 = vmatmul.mubr.msk.bf16.vlgmr.msra.gmra.mrb[0].mxu0 %vm411_vm2, %v409_v18 }
 0x182   : > { %v453_v19 = vpop.f32.mrb[0].mxu1 }
 0x183   : > { %v738_v20 = vpop.f32.mrb[1].mxu1 }
 0x184   : > { %v456_v21 = vpop.f32.mrb[2].mxu1 }
 0x185   : > { %v739_v22 = vpop.f32.mrb[3].mxu1 }
 0x188   : > { %v539_v26 = vpop.f32.mrb[0].mxu0 }
 0x189   : > { %v752_v28 = vadd.f32 %v539_v26, %v453_v19  ;;  %v750_v29 = vpop.f32.mrb[1].mxu0 }
 0x18a   : > { %v542_v30 = vpop.f32.mrb[2].mxu0 }
 0x18b   : > { %v559_v31 = vmul.f32 %v752_v28, %v725_v25  ;;  %v751_v32 = vpop.f32.mrb[3].mxu0 }
 0x18d   : > { %v560_v33 = vadd.f32 %v559_v31, %v552_v27 }
 0x18f   : > { %561 = vst [vmem:[%s380_s28] sm:$0xff] %v560_v33 }
 0x190 PF: > { %s16_s25 = sadd.s32 1, %s841_s25   ;;  %s974_s21 = smov %s833_s23 }
 0x191   : > { %p13_p7 = scmp.ge.s32.totalorder %s16_s25, 6   ;;  %s975_s22 = smov %s837_s24 }
 0x192   : > { %s976_s23 = smov %s979_s26  ;;  %s977_s24 = smov %s983_s27 }
 0x193   :  { %15 = sbr.rel (!%p13_p7) target bundleno = 3 (0x3), region = 83 }

</bundles_post_ra>
